<compile_context>
chip_gen: v6e
topology: v6e:2x2x1
jax: 0.10.0
libtpu: 0.0.40
codegen_flags: <defaults>
</compile_context>

<pallas_src>
import functools

import jax
import jax.numpy as jnp
from jax.experimental import pallas as pl
from jax.experimental.pallas import tpu as pltpu

_BN_EPS = 1e-5
_VMEM_LIMIT = 48 * 1024 * 1024  # well above the ~4 MB/step footprint, < v7x physical


# ----------------------------------------------------------------------------
# small helpers
# ----------------------------------------------------------------------------
def _round_up(x, m):
    return (x + m - 1) // m * m


def _pad2(x, rows, cols):
    r, c = x.shape
    if r == rows and c == cols:
        return x
    return jnp.pad(x, ((0, rows - r), (0, cols - c)))


# ----------------------------------------------------------------------------
# Pallas kernels
# ----------------------------------------------------------------------------
def _gemm_kernel(x_ref, w_ref, shift_ref, o_ref, acc_ref, *, relu):
    """out = maybe_relu(x @ w + shift); bf16 operands, f32 accumulate/epilogue."""
    k = pl.program_id(2)

    @pl.when(k == 0)
    def _():
        acc_ref[...] = jnp.zeros_like(acc_ref)

    acc_ref[...] += jnp.dot(x_ref[...], w_ref[...],
                            preferred_element_type=jnp.float32)

    @pl.when(k == pl.num_programs(2) - 1)
    def _():
        y = acc_ref[...] + shift_ref[...]
        if relu:
            y = jnp.maximum(y, 0.0)
        o_ref[...] = y.astype(o_ref.dtype)


def _gemm_res_kernel(x_ref, w_ref, shift_ref, res_ref, o_ref, acc_ref, *, relu):
    """Same as _gemm_kernel but fuses '+ residual' into the epilogue."""
    k = pl.program_id(2)

    @pl.when(k == 0)
    def _():
        acc_ref[...] = jnp.zeros_like(acc_ref)

    acc_ref[...] += jnp.dot(x_ref[...], w_ref[...],
                            preferred_element_type=jnp.float32)

    @pl.when(k == pl.num_programs(2) - 1)
    def _():
        y = acc_ref[...] + shift_ref[...] + res_ref[...].astype(jnp.float32)
        if relu:
            y = jnp.maximum(y, 0.0)
        o_ref[...] = y.astype(o_ref.dtype)


def _maxpool_kernel(x_ref, o_ref, *, c):
    """2x2/stride-2 max-pool.  Input block (tb, 2, Wo, 2*c): the W pixel pair
    is merged into the lane dim, the H pair is a leading axis."""
    x = x_ref[...]                                   # (tb, 2, Wo, 2*c)
    h = jnp.maximum(x[:, 0], x[:, 1])                # pool over the H pair
    o_ref[...] = jnp.maximum(h[:, :, :c], h[:, :, c:])   # pool over the W pair


def _avgpool_kernel(x_ref, o_ref):
    s = x_ref.shape[1]
    x = x_ref[...].astype(jnp.float32)               # (Nb, S, C)
    o_ref[...] = jnp.sum(x, axis=1) * (1.0 / s)


def _fc_kernel(x_ref, w_ref, b_ref, o_ref):
    o_ref[...] = (jnp.dot(x_ref[...], w_ref[...],
                          preferred_element_type=jnp.float32) + b_ref[...])


# ----------------------------------------------------------------------------
# Fused GEMM wrapper (conv / BN / residual / ReLU epilogue)
# ----------------------------------------------------------------------------
def _choose_tiles(M, K, N):
    """Adaptive tile sizes: big tiles to kill grid-step overhead at batch=2,
    but small enough to stay a few MB of VMEM on every TPU generation."""
    tm = min(512, _round_up(M, 128))
    tn = min(256, _round_up(N, 128))
    kp0 = _round_up(K, 128)
    if kp0 <= 2048:
        tk = kp0                      # whole reduction in one K step
    else:
        tk = 512
        for cand in range(2048, 511, -128):
            if kp0 % cand == 0:
                tk = cand
                break
    # v7x has 2 TensorCores: keep >= 2 iterations on the parallel axes.
    m_tiles = _round_up(M, tm) // tm
    n_tiles = _round_up(N, tn) // tn
    if m_tiles * n_tiles < 2 and _round_up(N, 128) >= 256:
        tn = 128
    return tm, tn, tk


def matmul_fused(x, w, shift, res=None, relu=True, out_dtype=jnp.bfloat16):
    """out = maybe_relu(x @ w + shift [+ res]).

    x: (M, K) bf16, w: (K, N) bf16 (BN scale pre-folded), shift: (N,) f32,
    res: optional (M, N) bf16 residual added in the epilogue."""
    M, K = x.shape
    N = w.shape[1]
    tm, tn, tk = _choose_tiles(M, K, N)
    Mp, Kp, Np = _round_up(M, tm), _round_up(K, tk), _round_up(N, tn)

    xp = _pad2(x.astype(jnp.bfloat16), Mp, Kp)
    wp = _pad2(w.astype(jnp.bfloat16), Kp, Np)
    sp = _pad2(shift.reshape(1, -1).astype(jnp.float32), 1, Np)

    in_specs = [
        pl.BlockSpec((tm, tk), lambda i, j, k: (i, k)),
        pl.BlockSpec((tk, tn), lambda i, j, k: (k, j)),
        pl.BlockSpec((1, tn), lambda i, j, k: (0, j)),
    ]
    args = [xp, wp, sp]
    if res is None:
        kern = functools.partial(_gemm_kernel, relu=relu)
    else:
        in_specs.append(pl.BlockSpec((tm, tn), lambda i, j, k: (i, j)))
        args.append(_pad2(res.astype(jnp.bfloat16), Mp, Np))
        kern = functools.partial(_gemm_res_kernel, relu=relu)

    out = pl.pallas_call(
        kern,
        out_shape=jax.ShapeDtypeStruct((Mp, Np), out_dtype),
        grid_spec=pltpu.PrefetchScalarGridSpec(
            num_scalar_prefetch=0,
            grid=(Mp // tm, Np // tn, Kp // tk),
            in_specs=in_specs,
            out_specs=pl.BlockSpec((tm, tn), lambda i, j, k: (i, j)),
            scratch_shapes=[pltpu.VMEM((tm, tn), jnp.float32)],
        ),
        compiler_params=pltpu.CompilerParams(
            dimension_semantics=("parallel", "parallel", "arbitrary"),
            vmem_limit_bytes=_VMEM_LIMIT),
    )(*args)
    return out[:M, :N]


# ----------------------------------------------------------------------------
# Pooling / dense wrappers
# ----------------------------------------------------------------------------
def max_pool_2x2(x):
    """F.max_pool2d(x, 2, stride=2) on an NHWC tensor, single-pass kernel."""
    Nb, H, W, C = x.shape
    assert H % 2 == 0 and W % 2 == 0
    Ho, Wo = H // 2, W // 2
    rows = Nb * Ho
    # contiguous (free) reshape: merge the W pixel pair into the channel/lane
    # dim and split H into (Ho, pair).
    xr = x.reshape(rows, 2, Wo, 2 * C)
    tb = rows
    for cand in (128, 64, 55, 32, 28, 16, 14, 8, 7, 4, 2, 1):
        if rows % cand == 0:
            tb = cand
            break
    out = pl.pallas_call(
        functools.partial(_maxpool_kernel, c=C),
        out_shape=jax.ShapeDtypeStruct((rows, Wo, C), x.dtype),
        grid=(rows // tb,),
        in_specs=[pl.BlockSpec((tb, 2, Wo, 2 * C), lambda i: (i, 0, 0, 0))],
        out_specs=pl.BlockSpec((tb, Wo, C), lambda i: (i, 0, 0)),
    )(xr)
    return out.reshape(Nb, Ho, Wo, C)


def global_avg_pool(x):
    """Mean over the spatial axis of (N, S, C) -> (N, C) in f32."""
    Nb, S, C = x.shape
    return pl.pallas_call(
        _avgpool_kernel,
        out_shape=jax.ShapeDtypeStruct((Nb, C), jnp.float32),
        grid=(1,),
        in_specs=[pl.BlockSpec((Nb, S, C), lambda i: (0, 0, 0))],
        out_specs=pl.BlockSpec((Nb, C), lambda i: (0, 0)),
    )(x)


def dense(x, w, b):
    """Small un-tiled Linear (M and N are tiny): x (M,K) f32, w (K,N) f32."""
    M, K = x.shape
    N = w.shape[1]
    Mp, Np = _round_up(M, 8), _round_up(N, 128)
    xp = _pad2(x.astype(jnp.bfloat16), Mp, K)
    wp = _pad2(w.astype(jnp.bfloat16), K, Np)
    bp = _pad2(b.reshape(1, -1).astype(jnp.float32), 1, Np)
    out = pl.pallas_call(
        _fc_kernel,
        out_shape=jax.ShapeDtypeStruct((Mp, Np), jnp.float32),
        grid=(1,),
        in_specs=[pl.BlockSpec((Mp, K), lambda i: (0, 0)),
                  pl.BlockSpec((K, Np), lambda i: (0, 0)),
                  pl.BlockSpec((1, Np), lambda i: (0, 0))],
        out_specs=pl.BlockSpec((Mp, Np), lambda i: (0, 0)),
    )(xp, wp, bp)
    return out[:M, :N]


# ----------------------------------------------------------------------------
# Conv2d + BN (+ residual + ReLU) : im2col glue + fused Pallas GEMM
# ----------------------------------------------------------------------------
def conv2d_bn(x, w, shift, stride, padding, relu, res=None):
    """x: (N,H,W,Cin) bf16 NHWC;  w: (kh,kw,Cin,Cout) bf16 with BN scale folded;
    shift: (Cout,) f32.  Optional res: (N,Ho,Wo,Cout) bf16 fused residual."""
    Nb, H, W, Cin = x.shape
    kh, kw, _, Cout = w.shape
    if padding > 0:
        x = jnp.pad(x, ((0, 0), (padding, padding), (padding, padding), (0, 0)))
    Hp, Wp = x.shape[1], x.shape[2]
    Ho = (Hp - kh) // stride + 1
    Wo = (Wp - kw) // stride + 1
    if kh == 1 and kw == 1:
        patches = x[:, 0:stride * Ho:stride, 0:stride * Wo:stride, :]
        patches = patches.reshape(Nb * Ho * Wo, Cin)
    else:
        # TODO(synk): the kh*kw taps are still materialized via im2col (in bf16);
        # folding them into the GEMM K grid axis would remove this HBM round trip.
        cols = [x[:, i:i + stride * Ho:stride, j:j + stride * Wo:stride, :]
                for i in range(kh) for j in range(kw)]
        patches = jnp.concatenate(cols, axis=-1).reshape(Nb * Ho * Wo, kh * kw * Cin)
    wm = w.reshape(kh * kw * Cin, Cout)
    rflat = None if res is None else res.reshape(-1, Cout)
    y = matmul_fused(patches, wm, shift, res=rflat, relu=relu)
    return y.reshape(Nb, Ho, Wo, Cout)


# ----------------------------------------------------------------------------
# Parameter construction (deterministic, synthetic)
# ----------------------------------------------------------------------------
def make_conv_bn_params(key, kh, kw, cin, cout, w_scale=1.0):
    k1, k2, k3 = jax.random.split(key, 3)
    fan_in = kh * kw * cin
    w = jax.random.normal(k1, (kh, kw, cin, cout), jnp.float32)
    w = w * ((2.0 / fan_in) ** 0.5) * w_scale
    gamma = 1.0 + 0.1 * jax.random.normal(k2, (cout,), jnp.float32)
    beta = 0.1 * jax.random.normal(k3, (cout,), jnp.float32)
    # inference BN with running_mean=0, running_var=1: fold scale into weights
    scale = gamma / jnp.sqrt(1.0 + _BN_EPS)
    w_folded = (w * scale[None, None, None, :]).astype(jnp.bfloat16)
    return dict(w=w_folded, shift=beta)


def make_resblock3(key, cin, cmid, cout, downsample=False):
    ks = jax.random.split(key, 4)
    stride = 2 if downsample else 1
    p = dict(
        conv1=make_conv_bn_params(ks[0], 1, 1, cin, cmid),
        conv2=make_conv_bn_params(ks[1], 3, 3, cmid, cmid),
        # small last-conv scale keeps the 50-block residual trunk numerically tame
        conv3=make_conv_bn_params(ks[2], 1, 1, cmid, cout, w_scale=0.2),
        stride=stride,
        proj=None,
    )
    if downsample or cin != cout:
        p["proj"] = make_conv_bn_params(ks[3], 1, 1, cin, cout)
    return p


def make_resnet152_params(key, in_channels, n_classes):
    k0, k1, k2 = jax.random.split(key, 3)
    params = {"conv1": make_conv_bn_params(k0, 7, 7, in_channels, 64)}
    spec = []
    spec += [(64, 64, 256, False), (256, 64, 256, False), (256, 64, 256, False)]
    spec += [(256, 128, 512, True)] + [(512, 128, 512, False)] * 7
    spec += [(512, 256, 1024, True)] + [(1024, 256, 1024, False)] * 35
    spec += [(1024, 512, 2048, True)] + [(2048, 512, 2048, False)] * 2
    bkeys = jax.random.split(k1, len(spec))
    params["blocks"] = [make_resblock3(bk, ci, cm, co, ds)
                        for bk, (ci, cm, co, ds) in zip(bkeys, spec)]
    kw, kb = jax.random.split(k2)
    params["fc_w"] = jax.random.normal(kw, (2048, n_classes), jnp.float32) * (1.0 / 2048) ** 0.5
    params["fc_b"] = 0.01 * jax.random.normal(kb, (n_classes,), jnp.float32)
    return params


# ----------------------------------------------------------------------------
# Forward pass
# ----------------------------------------------------------------------------
def resblock3_forward(x, p):
    s = p["stride"]
    if p["proj"] is not None:
        res = conv2d_bn(x, p["proj"]["w"], p["proj"]["shift"],
                        stride=s, padding=0, relu=False)
    else:
        res = x
    h = conv2d_bn(x, p["conv1"]["w"], p["conv1"]["shift"],
                  stride=1, padding=0, relu=True)
    h = conv2d_bn(h, p["conv2"]["w"], p["conv2"]["shift"],
                  stride=s, padding=1, relu=True)
    # conv3 + BN + residual add + ReLU fused into a single GEMM epilogue
    h = conv2d_bn(h, p["conv3"]["w"], p["conv3"]["shift"],
                  stride=1, padding=0, relu=True, res=res)
    return h


def resnet152_forward(x_nchw, params):
    x = jnp.transpose(x_nchw, (0, 2, 3, 1)).astype(jnp.bfloat16)  # NCHW -> NHWC bf16
    p = params["conv1"]
    x = conv2d_bn(x, p["w"], p["shift"], stride=2, padding=1, relu=True)
    x = max_pool_2x2(x)
    for bp in params["blocks"]:
        x = resblock3_forward(x, bp)
    Nb, H, W, C = x.shape
    assert H == 7 and W == 7 and C == 2048, (H, W, C)
    pooled = global_avg_pool(x.reshape(Nb, H * W, C))   # avg_pool2d(7) + flatten
    logits = dense(pooled, params["fc_w"], params["fc_b"])
    return logits


# ----------------------------------------------------------------------------
if __name__ == "__main__":
    key = jax.random.PRNGKey(0)
    k_params, k_x = jax.random.split(key)

    in_channels, n_classes = 3, 10
    batch = 2
    # avg_pool2d(7) + Linear(2048) force a 7x7 final feature map => 224x224 input
    x = jax.random.normal(k_x, (batch, in_channels, 224, 224), jnp.float32)

    params = make_resnet152_params(k_params, in_channels, n_classes)

    logits = resnet152_forward(x, params)
    logits = jax.block_until_ready(logits)

    assert logits.shape == (batch, n_classes), logits.shape
    assert bool(jnp.all(jnp.isfinite(logits)))
    print("KERNEL_OK")
</pallas_src>

<mosaic_0001>
module attributes {stable_mosaic.version = 11 : i64} {
  func.func @_gemm_kernel(%arg0: i32, %arg1: i32, %arg2: i32, %arg3: memref<512x256xbf16, #tpu.memory_space<vmem>>, %arg4: memref<256x128xbf16, #tpu.memory_space<vmem>>, %arg5: memref<1x128xf32, #tpu.memory_space<vmem>>, %arg6: memref<512x128xbf16, #tpu.memory_space<vmem>>, %arg7: memref<512x128xf32, #tpu.memory_space<vmem>>) attributes {dimension_semantics = [#tpu.dimension_semantics<parallel>, #tpu.dimension_semantics<parallel>, #tpu.dimension_semantics<arbitrary>], iteration_bounds = array<i64: 48, 1, 1>, scalar_prefetch = 0 : i64, scratch_operands = 1 : i64, tpu.core_type = #tpu.core_type<tc>, window_params = [{transform_indices = @transform_0, window_bounds = array<i64: 512, 256>}, {transform_indices = @transform_1, window_bounds = array<i64: 256, 128>}, {transform_indices = @transform_2, window_bounds = array<i64: 1, 128>}, {transform_indices = @transform_3, window_bounds = array<i64: 512, 128>}]} {
    %c0_i32 = arith.constant 0 : i32
    %0 = arith.cmpi eq, %arg2, %c0_i32 : i32
    %1 = arith.extui %0 : i1 to i32
    %c0_i32_0 = arith.constant 0 : i32
    %2 = arith.cmpi ne, %1, %c0_i32_0 : i32
    scf.if %2 {
      %cst_10 = arith.constant 0.000000e+00 : f32
      %12 = vector.broadcast %cst_10 : f32 to vector<512x128xf32>
      %c0_11 = arith.constant 0 : index
      %c0_12 = arith.constant 0 : index
      %13 = vector.load %arg7[%c0_11, %c0_12] : memref<512x128xf32, #tpu.memory_space<vmem>>, vector<512x128xf32>
      tpu.vector_store %arg7[%c0_11, %c0_12], %12 {strides = array<i32>} : memref<512x128xf32, #tpu.memory_space<vmem>>, vector<512x128xf32>,
    } else {
    }
    %c0 = arith.constant 0 : index
    %c0_1 = arith.constant 0 : index
    %3 = vector.load %arg7[%c0, %c0_1] : memref<512x128xf32, #tpu.memory_space<vmem>>, vector<512x128xf32>
    %c0_2 = arith.constant 0 : index
    %c0_3 = arith.constant 0 : index
    %4 = vector.load %arg3[%c0_2, %c0_3] : memref<512x256xbf16, #tpu.memory_space<vmem>>, vector<512x256xbf16>
    %c0_4 = arith.constant 0 : index
    %c0_5 = arith.constant 0 : index
    %5 = vector.load %arg4[%c0_4, %c0_5] : memref<256x128xbf16, #tpu.memory_space<vmem>>, vector<256x128xbf16>
    %cst = arith.constant dense<0.000000e+00> : vector<512x128xf32>
    %6 = tpu.matmul %4, %5, %cst {dimension_numbers = #tpu.dot_dimension_numbers<[1], [0], [0], [1], [0, 0, 1, 1], [], []>} : vector<512x256xbf16>, vector<256x128xbf16>, vector<512x128xf32> -> vector<512x128xf32>
    %7 = arith.addf %3, %6 : vector<512x128xf32>
    %c0_6 = arith.constant 0 : index
    %c0_7 = arith.constant 0 : index
    %8 = vector.load %arg7[%c0_6, %c0_7] : memref<512x128xf32, #tpu.memory_space<vmem>>, vector<512x128xf32>
    tpu.vector_store %arg7[%c0_6, %c0_7], %7 {strides = array<i32>} : memref<512x128xf32, #tpu.memory_space<vmem>>, vector<512x128xf32>,
    %c0_i32_8 = arith.constant 0 : i32
    %9 = arith.cmpi eq, %arg2, %c0_i32_8 : i32
    %10 = arith.extui %9 : i1 to i32
    %c0_i32_9 = arith.constant 0 : i32
    %11 = arith.cmpi ne, %10, %c0_i32_9 : i32
    scf.if %11 {
      %c0_10 = arith.constant 0 : index
      %c0_11 = arith.constant 0 : index
      %12 = vector.load %arg7[%c0_10, %c0_11] : memref<512x128xf32, #tpu.memory_space<vmem>>, vector<512x128xf32>
      %c0_12 = arith.constant 0 : index
      %c0_13 = arith.constant 0 : index
      %13 = vector.load %arg5[%c0_12, %c0_13] : memref<1x128xf32, #tpu.memory_space<vmem>>, vector<1x128xf32>
      %14 = vector.broadcast %13 : vector<1x128xf32> to vector<512x128xf32>
      %15 = arith.addf %12, %14 : vector<512x128xf32>
      %cst_14 = arith.constant 0.000000e+00 : f32
      %16 = vector.broadcast %cst_14 : f32 to vector<512x128xf32>
      %17 = arith.maximumf %15, %16 : vector<512x128xf32>
      %18 = arith.truncf %17 : vector<512x128xf32> to vector<512x128xbf16>
      %c0_15 = arith.constant 0 : index
      %c0_16 = arith.constant 0 : index
      %19 = vector.load %arg6[%c0_15, %c0_16] : memref<512x128xbf16, #tpu.memory_space<vmem>>, vector<512x128xbf16>
      tpu.vector_store %arg6[%c0_15, %c0_16], %18 {strides = array<i32>} : memref<512x128xbf16, #tpu.memory_space<vmem>>, vector<512x128xbf16>,
    } else {
    }
    return
  }
  func.func @transform_0(%arg0: i32, %arg1: i32, %arg2: i32) -> (i32, i32) {
    %c0_i32 = arith.constant 0 : i32
    return %arg0, %arg2 : i32, i32
  }
  func.func @transform_1(%arg0: i32, %arg1: i32, %arg2: i32) -> (i32, i32) {
    %c0_i32 = arith.constant 0 : i32
    return %arg2, %arg1 : i32, i32
  }
  func.func @transform_2(%arg0: i32, %arg1: i32, %arg2: i32) -> (i32, i32) {
    %c0_i32 = arith.constant 0 : i32
    %c0_i32_0 = arith.constant 0 : i32
    return %c0_i32, %arg1 : i32, i32
  }
  func.func @transform_3(%arg0: i32, %arg1: i32, %arg2: i32) -> (i32, i32) {
    %c0_i32 = arith.constant 0 : i32
    return %arg0, %arg1 : i32, i32
  }
}

</mosaic_0001>

<bundles_post_ra>
// kernel: tpu_custom_call.1
= control target key start
LH: loop header
LB: loop body
LE: loop exit
PB: predicated region body
PF: predicated region fallthrough
CT: control target
= control target key end

     0   :  { %8 = vsyncpa [#allocation4], 0  ;;  %s3217_s0 = inlined_call_operand.hbm [shape: bf16[24576,256], index: 0, kind: input, shape index: {}]   ;;  %s3218_s1 = inlined_call_operand.hbm [shape: bf16[256,128], index: 1, kind: input, shape index: {}]   ;;  %s3219_s2 = inlined_call_operand.hbm [shape: f32[1,128], index: 2, kind: input, shape index: {}]   ;;  %s3220_s3 = inlined_call_operand.hbm [shape: bf16[24576,128], index: 3, kind: output, shape index: {}]  }
   0x1   :  { %10 = vsyncpa [#allocation4 + $0x1], 0 }
   0x2   :  { %11 = vsyncpa [#allocation7], 0 }
   0x3   :  { %12 = vsyncpa [#allocation5], 0 }
   0x4   :  { %14 = vsyncpa [#allocation5 + $0x1], 0  ;;  %s2831_s12 = smov 0   ;;  %s2833_s13 = smov 0  }
   0x5   :  { %s2835_s14 = smov 0   ;;  %s2837_s15 = smov 0  }
   0x6   :  { %s2839_s16 = smov 0   ;;  %s2841_s17 = smov 0  }
   0x7 LB: > { %s1977_s18 = sadd.s32 4294967295, %s2798_s17   ;;  %s1978_s19 = sadd.s32 4294967294, %s2798_s17   ;;  %s2798_s17 = sphi %s2841_s17, %s20_s17   ;;  %s2794_s16 = sphi %s2839_s16, %s3237_s16   ;;  %s2790_s15 = sphi %s2837_s15, %s3236_s15   ;;  %s2786_s14 = sphi %s2835_s14, %s3235_s14   ;;  %s2782_s13 = sphi %s2833_s13, %s3234_s13   ;;  %s2778_s12 = sphi %s2831_s12, %s3233_s12  }
   0x8   : > { %p61_p0 = scmp.ne.s32.totalorder %s2782_s13, %s2778_s12  ;;  %p2865_p1 = scmp.eq.s32.totalorder %s1977_s18, 0 }
   0x9   : > { %p2869_p2 = scmp.eq.s32.totalorder %s1977_s18, 47  ;;  %p147_p3 = scmp.eq.s32.totalorder %s1978_s19, 47 }
   0xa   : > { %s3223_s20 = scalar_select %p2865_p1, 1, 0 }
   0xb   : > { %p2875_p4 = por %p2865_p1, %p61_p0  ;;  %p1979_p5 = scmp.ge.s32.totalorder %s2798_s17, 1 }
   0xc   : > { %p2880_p6 = por %p147_p3, %p61_p0  ;;  %p154_p7 = scmp.lt.s32.totalorder %s2798_s17, 49 }
   0xd   : > { %s2800_s25 = smov [#allocation6]   ;;  %s2801_s28 = smov [#allocation8]  }
   0xe   : > { %s3226_s23 = scalar_select %p2880_p6, 1, 0 }
   0xf   : > { %p2885_p8 = pnand %p1979_p5, %p154_p7  ;;  %s170_s26 = sshll.u32 %s2800_s25, 4  ;;  %s171_s26 = int_to_ptr.vmem [resolvable:$true] %s170_s26 }
  0x10   : > { %s186_s29 = sshll.u32 %s2801_s28, 4  ;;  %s2645_s30 = scalar_lea.vmem %s171_s26, 2048  ;;  %s187_s29 = int_to_ptr.vmem [resolvable:$true] %s186_s29 }
  0x11   : > { %p2444_p9 = pneg %p2885_p8  ;;  %p2646_p12 = scmp.ne.s32.totalorder %s171_s26, %s2645_s30 }
  0x12   : > { %p2653_p3 = scmp.lt.s32.totalorder %s171_s26, %s171_s26  ;;  %p2654_p5 = scmp.lt.s32.totalorder %s2645_s30, %s2645_s30 }
  0x13   : > { %p2893_p10 = pnand %p2444_p9, %p2865_p1 }
  0x14   : > { %p2655_p7 = por %p2654_p5, %p2653_p3 }
  0x15   : > { %p2636_p11 = pneg %p2893_p10 }
  0x17   : > { %p2648_p13 = pnand %p2646_p12, %p2636_p11 }
  0x19   : > { %p2649_p0 = pneg %p2648_p13 }
  0x1b   : > { %p2656_p9 = pnand %p2655_p7, %p2649_p0 }
  0x1d   : > { %2659 = shalt.err (!%p2656_p9)
}
  0x1e   : > { %s2802_s4 = smov 64   ;;  %s2803_s5 = smov 4  }
  0x1f   : > { %2447 = dma.hbm_to_vmem [thread:$0]  (!%p2893_p10), %s3218_s1, 2048, %s171_s26, [#allocation7], %s2802_s4, %s2802_s4, %s2803_s5  }
  0x20   : > { %s2671_s8 = scalar_lea.vmem %s187_s29, 16  ;;  %s2678_s9 = scalar_lea.vmem %s187_s29, 32 }
  0x21   : > { %p2672_p6 = scmp.ne.s32.totalorder %s187_s29, %s2671_s8  ;;  %p2679_p1 = scmp.lt.s32.totalorder %s187_s29, %s187_s29 }
  0x22   : > { %p2680_p3 = scmp.lt.s32.totalorder %s2678_s9, %s2671_s8 }
  0x23   : > { %p2674_p12 = pnand %p2672_p6, %p2636_p11 }
  0x24   : > { %p2681_p0 = por %p2680_p3, %p2679_p1 }
  0x25   : > { %p2675_p13 = pneg %p2674_p12 }
  0x27   : > { %p2682_p5 = pnand %p2681_p0, %p2675_p13 }
  0x29   : > { %2685 = shalt.err (!%p2682_p5)
}
  0x2a   : > { %2450 = dma.hbm_to_vmem [thread:$0]  (!%p2893_p10), %s3219_s2, 16, %s187_s29, [#allocation7]  }
  0x2b   : > { %s39_s18 = sadd.s32 1, %s2794_s16  ;;  %s48_s19 = sadd.s32 1, %s2786_s14 }
  0x2c   : > { %p41_p1 = scmp.ge.s32.totalorder %s39_s18, 48  ;;  %p55_p6 = scmp.ne.s32.totalorder %s2786_s14, %s2782_s13 }
  0x2d   : > { %p56_p11 = scmp.eq.s32.totalorder %s2798_s17, 0  ;;  %p2461_p7 = scmp.lt.s32.totalorder %s2798_s17, 48 }
  0x2e   : > { %s3239_s18 = smov (%p41_p1, %s39_s18), 0  ;;  %p2925_p12 = por %p2869_p2, %p55_p6 }
  0x2f   : > { %p57_p9 = por %p56_p11, %p55_p6  ;;  %s43_s26 = ssub.s32 %s2794_s16, %s3239_s18 }
  0x30   : > { %s197_s27 = sand.u32 1, %s2786_s14   ;;  %p46_p13 = scmp.eq.s32.totalorder %s43_s26, 0 }
  0x31   : > { %s1983_s28 = sshll.u32 %s197_s27, 9  ;;  %s2143_s29 = sshll.u32 %s2794_s16, 13 }
  0x32   : > { %s2934_s30 = scalar_select %p46_p13, %s2786_s14, %s48_s19  }
  0x33   : > { %s210_s6 = scalar_lea.hbm %s3217_s0, %s2143_s29  ;;  %s201_s7 = scalar_lea.vmem [#allocation3], %s1983_s28 }
  0x34   : > { %s211_s8 = sshll.u32 %s201_s7, 4  ;;  %p2941_p10 = pnand %p2461_p7, %p57_p9  ;;  %s212_s8 = int_to_ptr.vmem [resolvable:$true] %s211_s8 }
  0x35   : > { %s198_s9 = scalar_lea.sflag [#allocation4], %s197_s27  ;;  %s2699_s10 = scalar_lea.vmem %s212_s8, 8192 }
  0x36   : > { %p2688_p2 = pneg %p2941_p10  ;;  %p2700_p3 = scmp.ne.s32.totalorder %s212_s8, %s2699_s10 }
  0x37   : > { %s2804_s11 = smov [#allocation3]  }
  0x38   : > { %p2702_p0 = pnand %p2700_p3, %p2688_p2  ;;  %s2704_s19 = sshll.u32 %s2804_s11, 4  ;;  %s2705_s19 = int_to_ptr.vmem [resolvable:$false] %s2704_s19 }
  0x39   : > { %s2706_s26 = scalar_lea.vmem %s2705_s19, 16384  ;;  %p2707_p1 = scmp.lt.s32.totalorder %s212_s8, %s2705_s19 }
  0x3a   : > { %p2703_p5 = pneg %p2702_p0  ;;  %p2708_p6 = scmp.lt.s32.totalorder %s2706_s26, %s2699_s10 }
  0x3c   : > { %p2709_p11 = por %p2708_p6, %p2707_p1 }
  0x3e   : > { %p2710_p7 = pnand %p2709_p11, %p2703_p5 }
  0x40   : > { %2713 = shalt.err (!%p2710_p7)
}
  0x41   : > { %s2805_s28 = smov 128   ;;  %s2806_s29 = smov 8  }
  0x42   : > { %2454 = dma.hbm_to_vmem [thread:$0]  (!%p2941_p10), %s210_s6, 8192, %s212_s8, %s198_s9, %s2805_s28, %s2805_s28, %s2806_s29  }
  0x43   : > { %223 = sbr.rel (%p2885_p8) target bundleno = 478 (0x1de), region = 32  ;;  %s2952_s27 = sand.u32 (!%p2885_p8), 1, %s2782_s13  }
  0x44   : > { %s1988_s4 = sshll.u32 (!%p2885_p8), %s2952_s27, 9  ;;  %s226_s5 = scalar_lea.sflag (!%p2885_p8), [#allocation4], %s2952_s27 }
  0x45   : > { %s2956_s7 = scalar_lea.vmem (!%p2885_p8), [#allocation3], %s1988_s4 }
  0x48   : > { %2765 = dma.done.wait (%p2875_p4), %s226_s5, 8192  }
  0x49   : > { %2767 = vsyncadd (%p2875_p4), %s226_s5, 4294959104  ;;  %p3231_p9 = scmp.ne.s32.totalorder %s3223_s20, 0 }
  0x4b   : > { %2769 = dma.done.wait (%p3231_p9), [#allocation7], 2064  }
  0x4c   : > { %2771 = vsyncadd (%p3231_p9), [#allocation7], 4294965232  ;;  %v2807_v0 = vmov 0   ;;  %v2522_v1 = vld [vmem:[#allocation6 + $0x38] sm:$0xff]   ;;  %v2523_v2 = vld [vmem:[#allocation6 + $0x30] sm:$0xff]   ;;  %s1991_s20 = sshll.u32 %s2952_s27, 8 }
  0x4d   : > { %909 = vmatprep.subr.bf16.mxu0 %v2807_v0  ;;  %2400 = vmatprep.subr.bf16.mxu1 %v2807_v0  ;;  %v2524_v3 = vld [vmem:[#allocation6 + $0x28] sm:$0xff]   ;;  %v2525_v4 = vld [vmem:[#allocation6 + $0x20] sm:$0xff]   ;;  %v2526_v5 = vld [vmem:[#allocation6 + $0x18] sm:$0xff]   ;;  %s3069_s22 = scalar_lea.vmem [#allocation9], %s1991_s20  ;;  %s2208_s24 = sshll.u32 %s2790_s15, 12 }
  0x4e   : > { %910 = vmatpush1.bf16.msra.mxu0 %v2522_v1  ;;  %2416 = vmatpush1.bf16.msra.mxu1 %v2522_v1  ;;  %v2540_v6 = vld [vmem:[%s2956_s7 + $0x4] ss:$8 sps:$4 sm:$0xff]   ;;  %v2527_v7 = vld [vmem:[#allocation6 + $0x10] sm:$0xff]   ;;  %v2530_v11 = vld [vmem:[#allocation6 + $0x78] sm:$0xff]   ;;  %s1863_s6 = sshll.u32 %s3069_s22, 4  ;;  %s3166_s9 = scalar_lea.hbm %s3220_s3, %s2208_s24  ;;  %s3168_s6 = int_to_ptr.vmem [resolvable:$true] %s1863_s6 }
  0x4f   : > { %911 = vmatprep.subr.bf16.mxu0 %v2807_v0  ;;  %2401 = vmatprep.subr.bf16.mxu1 %v2807_v0  ;;  %v2543_v8 = vld [vmem:[%s2956_s7 + $0x104] ss:$8 sps:$4 sm:$0xff]   ;;  %v2531_v12 = vld [vmem:[#allocation6 + $0x70] sm:$0xff]   ;;  %v2534_v15 = vld [vmem:[#allocation6 + $0x58] sm:$0xff]   ;;  %s1849_s15 = scalar_lea.sflag [#allocation5], %s2952_s27  ;;  %s2714_s10 = scalar_lea.vmem %s3168_s6, 4096 }
  0x50   : > { %941 = vmatprep.mubr.bf16.mxu0 %v2540_v6  ;;  %1069 = vmatprep.mubr.bf16.mxu1 %v2543_v8  ;;  %v2528_v9 = vld [vmem:[#allocation6 + $0x8] sm:$0xff]   ;;  %v2529_v10 = vld [vmem:[#allocation6] sm:$0xff]   ;;  %v2535_v16 = vld [vmem:[#allocation6 + $0x50] sm:$0xff]   ;;  %p2715_p4 = scmp.ne.s32.totalorder %s3168_s6, %s2714_s10  ;;  %s2808_s11 = smov [#allocation9]  }
  0x51   : > { %v2532_v13 = vld [vmem:[#allocation6 + $0x68] sm:$0xff]   ;;  %v2533_v14 = vld [vmem:[#allocation6 + $0x60] sm:$0xff]   ;;  %v2544_v21 = vld [vmem:[%s2956_s7 + $0x14] ss:$8 sps:$4 sm:$0xff]   ;;  %s2718_s19 = sshll.u32 %s2808_s11, 4  ;;  %s2719_s19 = int_to_ptr.vmem [resolvable:$false] %s2718_s19 }
  0x52   : > { %912 = vmatpush1.bf16.msra.mxu0 %v2523_v2  ;;  %2417 = vmatpush1.bf16.msra.mxu1 %v2523_v2  ;;  %v2536_v17 = vld [vmem:[#allocation6 + $0x48] sm:$0xff]   ;;  %v2537_v18 = vld [vmem:[#allocation6 + $0x40] sm:$0xff]   ;;  %v2546_v22 = vld [vmem:[%s2956_s7 + $0x114] ss:$8 sps:$4 sm:$0xff]   ;;  %p2716_p8 = pnand %p2715_p4, %p2925_p12  ;;  %s2720_s26 = scalar_lea.vmem %s2719_s19, 8192 }
  0x53   : > { %913 = vmatprep.subr.bf16.mxu0 %v2807_v0  ;;  %2402 = vmatprep.subr.bf16.mxu1 %v2807_v0  ;;  %v2538_v19 = vld [vmem:[%s2956_s7] ss:$8 sps:$4 sm:$0xff]   ;;  %v2548_v23 = vld [vmem:[%s2956_s7 + $0x10] ss:$8 sps:$4 sm:$0xff]   ;;  %v2550_v25 = vld [vmem:[%s2956_s7 + $0x24] ss:$8 sps:$4 sm:$0xff]   ;;  %p2721_p10 = scmp.lt.s32.totalorder %s3168_s6, %s2719_s19  ;;  %p2722_p2 = scmp.lt.s32.totalorder %s2720_s26, %s2714_s10 }
  0x54   : > { %v2541_v20 = vld [vmem:[%s2956_s7 + $0x100] ss:$8 sps:$4 sm:$0xff]   ;;  %v2549_v24 = vld [vmem:[%s2956_s7 + $0x110] ss:$8 sps:$4 sm:$0xff]   ;;  %v2552_v26 = vld [vmem:[%s2956_s7 + $0x124] ss:$8 sps:$4 sm:$0xff]   ;;  %p2717_p13 = pneg %p2716_p8 }
  0x55   : > { %v2554_v27 = vld [vmem:[%s2956_s7 + $0x20] ss:$8 sps:$4 sm:$0xff]   ;;  %v2556_v29 = vld [vmem:[%s2956_s7 + $0x34] ss:$8 sps:$4 sm:$0xff]   ;;  %v2560_v31 = vld [vmem:[%s2956_s7 + $0x30] ss:$8 sps:$4 sm:$0xff]   ;;  %p2723_p3 = por %p2722_p2, %p2721_p10 }
  0x56   : > { %914 = vmatpush1.bf16.msra.mxu0 %v2524_v3  ;;  %2418 = vmatpush1.bf16.msra.mxu1 %v2524_v3  ;;  %v2555_v28 = vld [vmem:[%s2956_s7 + $0x120] ss:$8 sps:$4 sm:$0xff]   ;;  %v2558_v30 = vld [vmem:[%s2956_s7 + $0x134] ss:$8 sps:$4 sm:$0xff]   ;;  %v2561_v32 = vld [vmem:[%s2956_s7 + $0x130] ss:$8 sps:$4 sm:$0xff]  }
  0x57   : > { %915 = vmatprep.subr.bf16.mxu0 %v2807_v0  ;;  %2403 = vmatprep.subr.bf16.mxu1 %v2807_v0  ;;  %v2562_v33 = vld [vmem:[%s2956_s7 + $0x44] ss:$8 sps:$4 sm:$0xff]   ;;  %v2566_v35 = vld [vmem:[%s2956_s7 + $0x40] ss:$8 sps:$4 sm:$0xff]   ;;  %v2568_v37 = vld [vmem:[%s2956_s7 + $0x54] ss:$8 sps:$4 sm:$0xff]   ;;  %p2724_p0 = pnand %p2723_p3, %p2717_p13 }
  0x58   : > { %v2564_v34 = vld [vmem:[%s2956_s7 + $0x144] ss:$8 sps:$4 sm:$0xff]   ;;  %v2567_v36 = vld [vmem:[%s2956_s7 + $0x140] ss:$8 sps:$4 sm:$0xff]   ;;  %v2570_v38 = vld [vmem:[%s2956_s7 + $0x154] ss:$8 sps:$4 sm:$0xff]  }
  0x59   : > { %v2572_v39 = vld [vmem:[%s2956_s7 + $0x50] ss:$8 sps:$4 sm:$0xff]   ;;  %v2574_v41 = vld [vmem:[%s2956_s7 + $0x64] ss:$8 sps:$4 sm:$0xff]   ;;  %v2578_v43 = vld [vmem:[%s2956_s7 + $0x60] ss:$8 sps:$4 sm:$0xff]  }
  0x5a   : > { %916 = vmatpush1.bf16.msra.mxu0 %v2525_v4  ;;  %2419 = vmatpush1.bf16.msra.mxu1 %v2525_v4  ;;  %v2573_v40 = vld [vmem:[%s2956_s7 + $0x150] ss:$8 sps:$4 sm:$0xff]   ;;  %v2576_v42 = vld [vmem:[%s2956_s7 + $0x164] ss:$8 sps:$4 sm:$0xff]   ;;  %v2579_v44 = vld [vmem:[%s2956_s7 + $0x160] ss:$8 sps:$4 sm:$0xff]  }
  0x5b   : > { %917 = vmatprep.subr.bf16.mxu0 %v2807_v0  ;;  %2404 = vmatprep.subr.bf16.mxu1 %v2807_v0  ;;  %v2580_v45 = vld [vmem:[%s2956_s7 + $0x74] ss:$8 sps:$4 sm:$0xff]   ;;  %v2584_v47 = vld [vmem:[%s2956_s7 + $0x70] ss:$8 sps:$4 sm:$0xff]   ;;  %v2586_v49 = vld [vmem:[%s2956_s7 + $0x84] ss:$8 sps:$4 sm:$0xff]  }
  0x5c   : > { %v2582_v46 = vld [vmem:[%s2956_s7 + $0x174] ss:$8 sps:$4 sm:$0xff]   ;;  %v2585_v48 = vld [vmem:[%s2956_s7 + $0x170] ss:$8 sps:$4 sm:$0xff]   ;;  %v2588_v50 = vld [vmem:[%s2956_s7 + $0x184] ss:$8 sps:$4 sm:$0xff]  }
  0x5d   : > { %v2590_v51 = vld [vmem:[%s2956_s7 + $0x80] ss:$8 sps:$4 sm:$0xff]   ;;  %v2592_v53 = vld [vmem:[%s2956_s7 + $0x94] ss:$8 sps:$4 sm:$0xff]   ;;  %v2596_v55 = vld [vmem:[%s2956_s7 + $0x90] ss:$8 sps:$4 sm:$0xff]  }
  0x5e   : > { %918 = vmatpush1.bf16.msra.mxu0 %v2526_v5  ;;  %2420 = vmatpush1.bf16.msra.mxu1 %v2526_v5  ;;  %v2591_v52 = vld [vmem:[%s2956_s7 + $0x180] ss:$8 sps:$4 sm:$0xff]   ;;  %v2594_v54 = vld [vmem:[%s2956_s7 + $0x194] ss:$8 sps:$4 sm:$0xff]   ;;  %v2597_v56 = vld [vmem:[%s2956_s7 + $0x190] ss:$8 sps:$4 sm:$0xff]  }
  0x5f   : > { %919 = vmatprep.subr.bf16.mxu0 %v2807_v0  ;;  %2405 = vmatprep.subr.bf16.mxu1 %v2807_v0  ;;  %v2598_v57 = vld [vmem:[%s2956_s7 + $0xa4] ss:$8 sps:$4 sm:$0xff]   ;;  %v2602_v59 = vld [vmem:[%s2956_s7 + $0xa0] ss:$8 sps:$4 sm:$0xff]   ;;  %v2604_v61 = vld [vmem:[%s2956_s7 + $0xb4] ss:$8 sps:$4 sm:$0xff]  }
  0x60   : > { %v2600_v58 = vld [vmem:[%s2956_s7 + $0x1a4] ss:$8 sps:$4 sm:$0xff]   ;;  %v2603_v60 = vld [vmem:[%s2956_s7 + $0x1a0] ss:$8 sps:$4 sm:$0xff]   ;;  %v2606_v62 = vld [vmem:[%s2956_s7 + $0x1b4] ss:$8 sps:$4 sm:$0xff]  }
  0x61   : > { %v2608_v63 = vld [vmem:[%s2956_s7 + $0xb0] ss:$8 sps:$4 sm:$0xff]   ;;  %v2610_v1 = vld [vmem:[%s2956_s7 + $0xc4] ss:$8 sps:$4 sm:$0xff]   ;;  %v2614_v3 = vld [vmem:[%s2956_s7 + $0xc0] ss:$8 sps:$4 sm:$0xff]  }
  0x62   : > { %920 = vmatpush1.bf16.msra.mxu0 %v2527_v7  ;;  %2421 = vmatpush1.bf16.msra.mxu1 %v2527_v7  ;;  %v2612_v2 = vld [vmem:[%s2956_s7 + $0x1c4] ss:$8 sps:$4 sm:$0xff]   ;;  %v2615_v4 = vld [vmem:[%s2956_s7 + $0x1c0] ss:$8 sps:$4 sm:$0xff]   ;;  %v2616_v5 = vld [vmem:[%s2956_s7 + $0xd4] ss:$8 sps:$4 sm:$0xff]  }
  0x63   : > { %921 = vmatprep.subr.bf16.mxu0 %v2807_v0  ;;  %2406 = vmatprep.subr.bf16.mxu1 %v2807_v0  ;;  %v2618_v6 = vld [vmem:[%s2956_s7 + $0x1d4] ss:$8 sps:$4 sm:$0xff]   ;;  %v2620_v7 = vld [vmem:[%s2956_s7 + $0xd0] ss:$8 sps:$4 sm:$0xff]  }
  0x64   : > { %v2621_v8 = vld [vmem:[%s2956_s7 + $0x1d0] ss:$8 sps:$4 sm:$0xff]  }
  0x66   : > { %922 = vmatpush1.bf16.msra.mxu0 %v2528_v9  ;;  %2422 = vmatpush1.bf16.msra.mxu1 %v2528_v9  ;;  %v2622_v9 = vld [vmem:[%s2956_s7 + $0xe4] ss:$8 sps:$4 sm:$0xff]  }
  0x67   : > { %923 = vmatprep.subr.bf16.mxu0 %v2807_v0  ;;  %2407 = vmatprep.subr.bf16.mxu1 %v2807_v0 }
  0x6a   : > { %924 = vmatpush1.bf16.msra.mxu0 %v2529_v10  ;;  %2423 = vmatpush1.bf16.msra.mxu1 %v2529_v10  ;;  %v2624_v10 = vld [vmem:[%s2956_s7 + $0x1e4] ss:$8 sps:$4 sm:$0xff]  }
  0x6b   : > { %925 = vmatprep.subr.bf16.mxu0 %v2807_v0  ;;  %2408 = vmatprep.subr.bf16.mxu1 %v2807_v0 }
  0x6e   : > { %926 = vmatpush2.bf16.msra.mxu0 %v2530_v11  ;;  %2424 = vmatpush2.bf16.msra.mxu1 %v2530_v11  ;;  %v2626_v11 = vld [vmem:[%s2956_s7 + $0xe0] ss:$8 sps:$4 sm:$0xff]  }
  0x6f   : > { %927 = vmatprep.subr.bf16.mxu0 %v2807_v0  ;;  %2409 = vmatprep.subr.bf16.mxu1 %v2807_v0 }
  0x72   : > { %928 = vmatpush2.bf16.msra.mxu0 %v2531_v12  ;;  %2425 = vmatpush2.bf16.msra.mxu1 %v2531_v12  ;;  %v2627_v12 = vld [vmem:[%s2956_s7 + $0x1e0] ss:$8 sps:$4 sm:$0xff]  }
  0x73   : > { %929 = vmatprep.subr.bf16.mxu0 %v2807_v0  ;;  %2410 = vmatprep.subr.bf16.mxu1 %v2807_v0 }
  0x76   : > { %930 = vmatpush2.bf16.msra.mxu0 %v2532_v13  ;;  %2426 = vmatpush2.bf16.msra.mxu1 %v2532_v13  ;;  %v2628_v13 = vld [vmem:[%s2956_s7 + $0xf4] ss:$8 sps:$4 sm:$0xff]  }
  0x77   : > { %931 = vmatprep.subr.bf16.mxu0 %v2807_v0  ;;  %2411 = vmatprep.subr.bf16.mxu1 %v2807_v0 }
  0x7a   : > { %932 = vmatpush2.bf16.msra.mxu0 %v2533_v14  ;;  %2427 = vmatpush2.bf16.msra.mxu1 %v2533_v14  ;;  %v2630_v14 = vld [vmem:[%s2956_s7 + $0x1f4] ss:$8 sps:$4 sm:$0xff]  }
  0x7b   : > { %933 = vmatprep.subr.bf16.mxu0 %v2807_v0  ;;  %2412 = vmatprep.subr.bf16.mxu1 %v2807_v0 }
  0x7e   : > { %934 = vmatpush2.bf16.msra.mxu0 %v2534_v15  ;;  %2428 = vmatpush2.bf16.msra.mxu1 %v2534_v15  ;;  %v2632_v15 = vld [vmem:[%s2956_s7 + $0xf0] ss:$8 sps:$4 sm:$0xff]  }
  0x7f   : > { %935 = vmatprep.subr.bf16.mxu0 %v2807_v0  ;;  %2413 = vmatprep.subr.bf16.mxu1 %v2807_v0 }
  0x82   : > { %936 = vmatpush2.bf16.msra.mxu0 %v2535_v16  ;;  %2429 = vmatpush2.bf16.msra.mxu1 %v2535_v16  ;;  %v2633_v16 = vld [vmem:[%s2956_s7 + $0x1f0] ss:$8 sps:$4 sm:$0xff]  }
  0x83   : > { %937 = vmatprep.subr.bf16.mxu0 %v2807_v0  ;;  %2414 = vmatprep.subr.bf16.mxu1 %v2807_v0 }
  0x86   : > { %938 = vmatpush2.bf16.msra.mxu0 %v2536_v17  ;;  %2430 = vmatpush2.bf16.msra.mxu1 %v2536_v17 }
  0x87   : > { %939 = vmatprep.subr.bf16.mxu0 %v2807_v0  ;;  %2415 = vmatprep.subr.bf16.mxu1 %v2807_v0  ;;  %v2609_v0 = vld [vmem:[%s2956_s7 + $0x1b0] ss:$8 sps:$4 sm:$0xff]  }
  0x8a   : > { %940 = vmatpush2.bf16.msra.mxu0 %v2537_v18  ;;  %2431 = vmatpush2.bf16.msra.mxu1 %v2537_v18  ;;  %v3062_v18 = vld [vmem:[#allocation8] ss:$0 sm:$0xff] }
  0x8d   : > { %942 = vmatmul.mubr.bf16.vlgmr.msra.gmra.mxu0 %v2538_v19  ;;  %1070 = vmatmul.mubr.bf16.vlgmr.msra.gmra.mxu1 %v2541_v20 }
  0x8e   : > { %949 = vmatprep.mubr.bf16.mxu0 %v2544_v21  ;;  %1077 = vmatprep.mubr.bf16.mxu1 %v2546_v22 }
  0x95   : > { %950 = vmatmul.mubr.bf16.gmra.mxu0 %v2548_v23  ;;  %1078 = vmatmul.mubr.bf16.gmra.mxu1 %v2549_v24 }
  0x96   : > { %957 = vmatprep.mubr.bf16.mxu0 %v2550_v25  ;;  %1085 = vmatprep.mubr.bf16.mxu1 %v2552_v26 }
  0x9d   : > { %958 = vmatmul.mubr.bf16.gmra.mxu0 %v2554_v27  ;;  %1086 = vmatmul.mubr.bf16.gmra.mxu1 %v2555_v28 }
  0x9e   : > { %965 = vmatprep.mubr.bf16.mxu0 %v2556_v29  ;;  %1093 = vmatprep.mubr.bf16.mxu1 %v2558_v30 }
  0xa5   : > { %966 = vmatmul.mubr.bf16.gmra.mxu0 %v2560_v31  ;;  %1094 = vmatmul.mubr.bf16.gmra.mxu1 %v2561_v32 }
  0xa6   : > { %973 = vmatprep.mubr.bf16.mxu0 %v2562_v33  ;;  %1101 = vmatprep.mubr.bf16.mxu1 %v2564_v34 }
  0xad   : > { %974 = vmatmul.mubr.bf16.gmra.mxu0 %v2566_v35  ;;  %1102 = vmatmul.mubr.bf16.gmra.mxu1 %v2567_v36 }
  0xae   : > { %981 = vmatprep.mubr.bf16.mxu0 %v2568_v37  ;;  %1109 = vmatprep.mubr.bf16.mxu1 %v2570_v38 }
  0xb5   : > { %982 = vmatmul.mubr.bf16.gmra.mxu0 %v2572_v39  ;;  %1110 = vmatmul.mubr.bf16.gmra.mxu1 %v2573_v40 }
  0xb6   : > { %989 = vmatprep.mubr.bf16.mxu0 %v2574_v41  ;;  %1117 = vmatprep.mubr.bf16.mxu1 %v2576_v42 }
  0xbd   : > { %990 = vmatmul.mubr.bf16.gmra.mxu0 %v2578_v43  ;;  %1118 = vmatmul.mubr.bf16.gmra.mxu1 %v2579_v44 }
  0xbe   : > { %997 = vmatprep.mubr.bf16.mxu0 %v2580_v45  ;;  %1125 = vmatprep.mubr.bf16.mxu1 %v2582_v46 }
  0xc5   : > { %998 = vmatmul.mubr.bf16.gmra.mxu0 %v2584_v47  ;;  %1126 = vmatmul.mubr.bf16.gmra.mxu1 %v2585_v48 }
  0xc6   : > { %1005 = vmatprep.mubr.bf16.mxu0 %v2586_v49  ;;  %1133 = vmatprep.mubr.bf16.mxu1 %v2588_v50 }
  0xcd   : > { %1006 = vmatmul.mubr.bf16.gmra.mxu0 %v2590_v51  ;;  %1134 = vmatmul.mubr.bf16.gmra.mxu1 %v2591_v52 }
  0xce   : > { %1013 = vmatprep.mubr.bf16.mxu0 %v2592_v53  ;;  %1141 = vmatprep.mubr.bf16.mxu1 %v2594_v54 }
  0xd5   : > { %1014 = vmatmul.mubr.bf16.gmra.mxu0 %v2596_v55  ;;  %1142 = vmatmul.mubr.bf16.gmra.mxu1 %v2597_v56 }
  0xd6   : > { %1021 = vmatprep.mubr.bf16.mxu0 %v2598_v57  ;;  %1149 = vmatprep.mubr.bf16.mxu1 %v2600_v58 }
  0xdd   : > { %1022 = vmatmul.mubr.bf16.gmra.mxu0 %v2602_v59  ;;  %1150 = vmatmul.mubr.bf16.gmra.mxu1 %v2603_v60 }
  0xde   : > { %1029 = vmatprep.mubr.bf16.mxu0 %v2604_v61  ;;  %1157 = vmatprep.mubr.bf16.mxu1 %v2606_v62 }
  0xe5   : > { %1030 = vmatmul.mubr.bf16.gmra.mxu0 %v2608_v63  ;;  %1158 = vmatmul.mubr.bf16.gmra.mxu1 %v2609_v0 }
  0xe6   : > { %1037 = vmatprep.mubr.bf16.mxu0 %v2610_v1  ;;  %1165 = vmatprep.mubr.bf16.mxu1 %v2612_v2 }
  0xed   : > { %1038 = vmatmul.mubr.bf16.gmra.mxu0 %v2614_v3  ;;  %1166 = vmatmul.mubr.bf16.gmra.mxu1 %v2615_v4 }
  0xee   : > { %1045 = vmatprep.mubr.bf16.mxu0 %v2616_v5  ;;  %1173 = vmatprep.mubr.bf16.mxu1 %v2618_v6 }
  0xf5   : > { %1046 = vmatmul.mubr.bf16.gmra.mxu0 %v2620_v7  ;;  %1174 = vmatmul.mubr.bf16.gmra.mxu1 %v2621_v8 }
  0xf6   : > { %1053 = vmatprep.mubr.bf16.mxu0 %v2622_v9  ;;  %1181 = vmatprep.mubr.bf16.mxu1 %v2624_v10 }
  0xfd   : > { %1054 = vmatmul.mubr.bf16.gmra.mxu0 %v2626_v11  ;;  %1182 = vmatmul.mubr.bf16.gmra.mxu1 %v2627_v12 }
  0xfe   : > { %1061 = vmatprep.mubr.bf16.mxu0 %v2628_v13  ;;  %1189 = vmatprep.mubr.bf16.mxu1 %v2630_v14 }
 0x105   : > { %1062 = vmatmul.mubr.bf16.gmra.mxu0 %v2632_v15  ;;  %1190 = vmatmul.mubr.bf16.gmra.mxu1 %v2633_v16 }
 0x14d   : > { %v943_v17 = vpop.f32.mrf.mxu0  ;;  %v1071_v19 = vpop.f32.mrf.mxu1 }
 0x14e   : > { %v1400_v22 = vadd.f32 %v3062_v18, %v943_v17  ;;  %v1432_v23 = vadd.f32 %v3062_v18, %v1071_v19 }
 0x14f   : > { %v945_v20 = vpop.f32.mrf.mxu0  ;;  %v1073_v21 = vpop.f32.mrf.mxu1 }
 0x150   : > { %v1464_v30 = vmax.f32 %v1400_v22, 0.0  ;;  %v1496_v31 = vmax.f32 %v1432_v23, 0.0 }
 0x151   : > { %v946_v24 = vpop.f32.mrf.mxu0  ;;  %v1074_v25 = vpop.f32.mrf.mxu1 }
 0x152   : > { %v1401_v26 = vadd.f32 %v3062_v18, %v946_v24  ;;  %v1433_v27 = vadd.f32 %v3062_v18, %v1074_v25 }
 0x153   : > { %v948_v28 = vpop.f32.mrf.mxu0  ;;  %v1076_v29 = vpop.f32.mrf.mxu1 }
 0x154   : > { %v1465_v32 = vmax.f32 %v1401_v26, 0.0  ;;  %v1497_v33 = vmax.f32 %v1433_v27, 0.0 }
 0x155   : > { %v951_v34 = vpop.f32.mrf.mxu0  ;;  %v1079_v35 = vpop.f32.mrf.mxu1 }
 0x156   : > { %v2212_v36 = vpack.c.bf16 %v1465_v32, %v1464_v30  ;;  %v2292_v37 = vpack.c.bf16 %v1497_v33, %v1496_v31  ;;  %v1402_v40 = vadd.f32 %v3062_v18, %v951_v34  ;;  %v1434_v41 = vadd.f32 %v3062_v18, %v1079_v35 }
 0x157   : > { %v953_v38 = vpop.f32.mrf.mxu0  ;;  %v1081_v39 = vpop.f32.mrf.mxu1 }
 0x158   : > { %2213 = vst [vmem:[%s3069_s22] sm:$0xff] %v2212_v36   ;;  %2384 = vst [vmem:[%s3069_s22 + $0x80] sm:$0xff] %v2292_v37   ;;  %v1466_v48 = vmax.f32 %v1402_v40, 0.0  ;;  %v1498_v49 = vmax.f32 %v1434_v41, 0.0 }
 0x159   : > { %v954_v42 = vpop.f32.mrf.mxu0  ;;  %v1082_v43 = vpop.f32.mrf.mxu1 }
 0x15a   : > { %v1403_v44 = vadd.f32 %v3062_v18, %v954_v42  ;;  %v1435_v45 = vadd.f32 %v3062_v18, %v1082_v43 }
 0x15b   : > { %v956_v46 = vpop.f32.mrf.mxu0  ;;  %v1084_v47 = vpop.f32.mrf.mxu1 }
 0x15c   : > { %v1467_v50 = vmax.f32 %v1403_v44, 0.0  ;;  %v1499_v51 = vmax.f32 %v1435_v45, 0.0 }
 0x15d   : > { %v959_v52 = vpop.f32.mrf.mxu0  ;;  %v1087_v53 = vpop.f32.mrf.mxu1 }
 0x15e   : > { %v2217_v54 = vpack.c.bf16 %v1467_v50, %v1466_v48  ;;  %v2297_v55 = vpack.c.bf16 %v1499_v51, %v1498_v49  ;;  %v1404_v58 = vadd.f32 %v3062_v18, %v959_v52  ;;  %v1436_v59 = vadd.f32 %v3062_v18, %v1087_v53 }
 0x15f   : > { %v961_v56 = vpop.f32.mrf.mxu0  ;;  %v1089_v57 = vpop.f32.mrf.mxu1 }
 0x160   : > { %2369 = vst [vmem:[%s3069_s22 + $0x8] sm:$0xff] %v2217_v54   ;;  %2385 = vst [vmem:[%s3069_s22 + $0x88] sm:$0xff] %v2297_v55   ;;  %v1468_v2 = vmax.f32 %v1404_v58, 0.0  ;;  %v1500_v3 = vmax.f32 %v1436_v59, 0.0 }
 0x161   : > { %v962_v60 = vpop.f32.mrf.mxu0  ;;  %v1090_v61 = vpop.f32.mrf.mxu1 }
 0x162   : > { %v1405_v62 = vadd.f32 %v3062_v18, %v962_v60  ;;  %v1437_v63 = vadd.f32 %v3062_v18, %v1090_v61 }
 0x163   : > { %v964_v0 = vpop.f32.mrf.mxu0  ;;  %v1092_v1 = vpop.f32.mrf.mxu1 }
 0x164   : > { %v1469_v4 = vmax.f32 %v1405_v62, 0.0  ;;  %v1501_v5 = vmax.f32 %v1437_v63, 0.0 }
 0x165   : > { %v967_v6 = vpop.f32.mrf.mxu0  ;;  %v1095_v7 = vpop.f32.mrf.mxu1 }
 0x166   : > { %v2222_v8 = vpack.c.bf16 %v1469_v4, %v1468_v2  ;;  %v2302_v9 = vpack.c.bf16 %v1501_v5, %v1500_v3  ;;  %v1406_v12 = vadd.f32 %v3062_v18, %v967_v6  ;;  %v1438_v13 = vadd.f32 %v3062_v18, %v1095_v7 }
 0x167   : > { %v969_v10 = vpop.f32.mrf.mxu0  ;;  %v1097_v11 = vpop.f32.mrf.mxu1 }
 0x168   : > { %2370 = vst [vmem:[%s3069_s22 + $0x10] sm:$0xff] %v2222_v8   ;;  %2386 = vst [vmem:[%s3069_s22 + $0x90] sm:$0xff] %v2302_v9   ;;  %v1470_v21 = vmax.f32 %v1406_v12, 0.0  ;;  %v1502_v22 = vmax.f32 %v1438_v13, 0.0 }
 0x169   : > { %v970_v14 = vpop.f32.mrf.mxu0  ;;  %v1098_v15 = vpop.f32.mrf.mxu1 }
 0x16a   : > { %v1407_v16 = vadd.f32 %v3062_v18, %v970_v14  ;;  %v1439_v17 = vadd.f32 %v3062_v18, %v1098_v15 }
 0x16b   : > { %v972_v19 = vpop.f32.mrf.mxu0  ;;  %v1100_v20 = vpop.f32.mrf.mxu1 }
 0x16c   : > { %v1471_v23 = vmax.f32 %v1407_v16, 0.0  ;;  %v1503_v24 = vmax.f32 %v1439_v17, 0.0 }
 0x16d   : > { %v975_v25 = vpop.f32.mrf.mxu0  ;;  %v1103_v26 = vpop.f32.mrf.mxu1 }
 0x16e   : > { %v2227_v27 = vpack.c.bf16 %v1471_v23, %v1470_v21  ;;  %v2307_v28 = vpack.c.bf16 %v1503_v24, %v1502_v22  ;;  %v1408_v31 = vadd.f32 %v3062_v18, %v975_v25  ;;  %v1440_v32 = vadd.f32 %v3062_v18, %v1103_v26 }
 0x16f   : > { %v977_v29 = vpop.f32.mrf.mxu0  ;;  %v1105_v30 = vpop.f32.mrf.mxu1 }
 0x170   : > { %2371 = vst [vmem:[%s3069_s22 + $0x18] sm:$0xff] %v2227_v27   ;;  %2387 = vst [vmem:[%s3069_s22 + $0x98] sm:$0xff] %v2307_v28   ;;  %v1472_v39 = vmax.f32 %v1408_v31, 0.0  ;;  %v1504_v40 = vmax.f32 %v1440_v32, 0.0 }
 0x171   : > { %v978_v33 = vpop.f32.mrf.mxu0  ;;  %v1106_v34 = vpop.f32.mrf.mxu1 }
 0x172   : > { %v1409_v35 = vadd.f32 %v3062_v18, %v978_v33  ;;  %v1441_v36 = vadd.f32 %v3062_v18, %v1106_v34 }
 0x173   : > { %v980_v37 = vpop.f32.mrf.mxu0  ;;  %v1108_v38 = vpop.f32.mrf.mxu1 }
 0x174   : > { %v1473_v41 = vmax.f32 %v1409_v35, 0.0  ;;  %v1505_v42 = vmax.f32 %v1441_v36, 0.0 }
 0x175   : > { %v983_v43 = vpop.f32.mrf.mxu0  ;;  %v1111_v44 = vpop.f32.mrf.mxu1 }
 0x176   : > { %v2232_v45 = vpack.c.bf16 %v1473_v41, %v1472_v39  ;;  %v2312_v46 = vpack.c.bf16 %v1505_v42, %v1504_v40  ;;  %v1410_v49 = vadd.f32 %v3062_v18, %v983_v43  ;;  %v1442_v50 = vadd.f32 %v3062_v18, %v1111_v44 }
 0x177   : > { %v985_v47 = vpop.f32.mrf.mxu0  ;;  %v1113_v48 = vpop.f32.mrf.mxu1 }
 0x178   : > { %2372 = vst [vmem:[%s3069_s22 + $0x20] sm:$0xff] %v2232_v45   ;;  %2388 = vst [vmem:[%s3069_s22 + $0xa0] sm:$0xff] %v2312_v46   ;;  %v1474_v57 = vmax.f32 %v1410_v49, 0.0  ;;  %v1506_v58 = vmax.f32 %v1442_v50, 0.0 }
 0x179   : > { %v986_v51 = vpop.f32.mrf.mxu0  ;;  %v1114_v52 = vpop.f32.mrf.mxu1 }
 0x17a   : > { %v1411_v53 = vadd.f32 %v3062_v18, %v986_v51  ;;  %v1443_v54 = vadd.f32 %v3062_v18, %v1114_v52 }
 0x17b   : > { %v988_v55 = vpop.f32.mrf.mxu0  ;;  %v1116_v56 = vpop.f32.mrf.mxu1 }
 0x17c   : > { %v1475_v59 = vmax.f32 %v1411_v53, 0.0  ;;  %v1507_v60 = vmax.f32 %v1443_v54, 0.0 }
 0x17d   : > { %v991_v61 = vpop.f32.mrf.mxu0  ;;  %v1119_v62 = vpop.f32.mrf.mxu1 }
 0x17e   : > { %v2237_v63 = vpack.c.bf16 %v1475_v59, %v1474_v57  ;;  %v2317_v0 = vpack.c.bf16 %v1507_v60, %v1506_v58  ;;  %v1412_v3 = vadd.f32 %v3062_v18, %v991_v61  ;;  %v1444_v4 = vadd.f32 %v3062_v18, %v1119_v62 }
 0x17f   : > { %v993_v1 = vpop.f32.mrf.mxu0  ;;  %v1121_v2 = vpop.f32.mrf.mxu1 }
 0x180   : > { %2373 = vst [vmem:[%s3069_s22 + $0x28] sm:$0xff] %v2237_v63   ;;  %2389 = vst [vmem:[%s3069_s22 + $0xa8] sm:$0xff] %v2317_v0   ;;  %v1476_v11 = vmax.f32 %v1412_v3, 0.0  ;;  %v1508_v12 = vmax.f32 %v1444_v4, 0.0 }
 0x181   : > { %v994_v5 = vpop.f32.mrf.mxu0  ;;  %v1122_v6 = vpop.f32.mrf.mxu1 }
 0x182   : > { %v1413_v7 = vadd.f32 %v3062_v18, %v994_v5  ;;  %v1445_v8 = vadd.f32 %v3062_v18, %v1122_v6 }
 0x183   : > { %v996_v9 = vpop.f32.mrf.mxu0  ;;  %v1124_v10 = vpop.f32.mrf.mxu1 }
 0x184   : > { %v1477_v13 = vmax.f32 %v1413_v7, 0.0  ;;  %v1509_v14 = vmax.f32 %v1445_v8, 0.0 }
 0x185   : > { %v999_v15 = vpop.f32.mrf.mxu0  ;;  %v1127_v16 = vpop.f32.mrf.mxu1 }
 0x186   : > { %v2242_v17 = vpack.c.bf16 %v1477_v13, %v1476_v11  ;;  %v2322_v19 = vpack.c.bf16 %v1509_v14, %v1508_v12  ;;  %v1414_v22 = vadd.f32 %v3062_v18, %v999_v15  ;;  %v1446_v23 = vadd.f32 %v3062_v18, %v1127_v16 }
 0x187   : > { %v1001_v20 = vpop.f32.mrf.mxu0  ;;  %v1129_v21 = vpop.f32.mrf.mxu1 }
 0x188   : > { %2374 = vst [vmem:[%s3069_s22 + $0x30] sm:$0xff] %v2242_v17   ;;  %2390 = vst [vmem:[%s3069_s22 + $0xb0] sm:$0xff] %v2322_v19   ;;  %v1478_v30 = vmax.f32 %v1414_v22, 0.0  ;;  %v1510_v31 = vmax.f32 %v1446_v23, 0.0 }
 0x189   : > { %v1002_v24 = vpop.f32.mrf.mxu0  ;;  %v1130_v25 = vpop.f32.mrf.mxu1 }
 0x18a   : > { %v1415_v26 = vadd.f32 %v3062_v18, %v1002_v24  ;;  %v1447_v27 = vadd.f32 %v3062_v18, %v1130_v25 }
 0x18b   : > { %v1004_v28 = vpop.f32.mrf.mxu0  ;;  %v1132_v29 = vpop.f32.mrf.mxu1 }
 0x18c   : > { %v1479_v32 = vmax.f32 %v1415_v26, 0.0  ;;  %v1511_v33 = vmax.f32 %v1447_v27, 0.0 }
 0x18d   : > { %v1007_v34 = vpop.f32.mrf.mxu0  ;;  %v1135_v35 = vpop.f32.mrf.mxu1 }
 0x18e   : > { %v2247_v36 = vpack.c.bf16 %v1479_v32, %v1478_v30  ;;  %v2327_v37 = vpack.c.bf16 %v1511_v33, %v1510_v31  ;;  %v1416_v40 = vadd.f32 %v3062_v18, %v1007_v34  ;;  %v1448_v41 = vadd.f32 %v3062_v18, %v1135_v35 }
 0x18f   : > { %v1009_v38 = vpop.f32.mrf.mxu0  ;;  %v1137_v39 = vpop.f32.mrf.mxu1 }
 0x190   : > { %2375 = vst [vmem:[%s3069_s22 + $0x38] sm:$0xff] %v2247_v36   ;;  %2391 = vst [vmem:[%s3069_s22 + $0xb8] sm:$0xff] %v2327_v37   ;;  %v1480_v48 = vmax.f32 %v1416_v40, 0.0  ;;  %v1512_v49 = vmax.f32 %v1448_v41, 0.0 }
 0x191   : > { %v1010_v42 = vpop.f32.mrf.mxu0  ;;  %v1138_v43 = vpop.f32.mrf.mxu1 }
 0x192   : > { %v1417_v44 = vadd.f32 %v3062_v18, %v1010_v42  ;;  %v1449_v45 = vadd.f32 %v3062_v18, %v1138_v43 }
 0x193   : > { %v1012_v46 = vpop.f32.mrf.mxu0  ;;  %v1140_v47 = vpop.f32.mrf.mxu1 }
 0x194   : > { %v1481_v50 = vmax.f32 %v1417_v44, 0.0  ;;  %v1513_v51 = vmax.f32 %v1449_v45, 0.0 }
 0x195   : > { %v1015_v52 = vpop.f32.mrf.mxu0  ;;  %v1143_v53 = vpop.f32.mrf.mxu1 }
 0x196   : > { %v2252_v54 = vpack.c.bf16 %v1481_v50, %v1480_v48  ;;  %v2332_v55 = vpack.c.bf16 %v1513_v51, %v1512_v49  ;;  %v1418_v58 = vadd.f32 %v3062_v18, %v1015_v52  ;;  %v1450_v59 = vadd.f32 %v3062_v18, %v1143_v53 }
 0x197   : > { %v1017_v56 = vpop.f32.mrf.mxu0  ;;  %v1145_v57 = vpop.f32.mrf.mxu1 }
 0x198   : > { %2376 = vst [vmem:[%s3069_s22 + $0x40] sm:$0xff] %v2252_v54   ;;  %2392 = vst [vmem:[%s3069_s22 + $0xc0] sm:$0xff] %v2332_v55   ;;  %v1482_v2 = vmax.f32 %v1418_v58, 0.0  ;;  %v1514_v3 = vmax.f32 %v1450_v59, 0.0 }
 0x199   : > { %v1018_v60 = vpop.f32.mrf.mxu0  ;;  %v1146_v61 = vpop.f32.mrf.mxu1 }
 0x19a   : > { %v1419_v62 = vadd.f32 %v3062_v18, %v1018_v60  ;;  %v1451_v63 = vadd.f32 %v3062_v18, %v1146_v61 }
 0x19b   : > { %v1020_v0 = vpop.f32.mrf.mxu0  ;;  %v1148_v1 = vpop.f32.mrf.mxu1 }
 0x19c   : > { %v1483_v4 = vmax.f32 %v1419_v62, 0.0  ;;  %v1515_v5 = vmax.f32 %v1451_v63, 0.0 }
 0x19d   : > { %v1023_v6 = vpop.f32.mrf.mxu0  ;;  %v1151_v7 = vpop.f32.mrf.mxu1 }
 0x19e   : > { %v2257_v8 = vpack.c.bf16 %v1483_v4, %v1482_v2  ;;  %v2337_v9 = vpack.c.bf16 %v1515_v5, %v1514_v3  ;;  %v1420_v12 = vadd.f32 %v3062_v18, %v1023_v6  ;;  %v1452_v13 = vadd.f32 %v3062_v18, %v1151_v7 }
 0x19f   : > { %v1025_v10 = vpop.f32.mrf.mxu0  ;;  %v1153_v11 = vpop.f32.mrf.mxu1 }
 0x1a0   : > { %2377 = vst [vmem:[%s3069_s22 + $0x48] sm:$0xff] %v2257_v8   ;;  %2393 = vst [vmem:[%s3069_s22 + $0xc8] sm:$0xff] %v2337_v9   ;;  %v1484_v21 = vmax.f32 %v1420_v12, 0.0  ;;  %v1516_v22 = vmax.f32 %v1452_v13, 0.0 }
 0x1a1   : > { %v1026_v14 = vpop.f32.mrf.mxu0  ;;  %v1154_v15 = vpop.f32.mrf.mxu1 }
 0x1a2   : > { %v1421_v16 = vadd.f32 %v3062_v18, %v1026_v14  ;;  %v1453_v17 = vadd.f32 %v3062_v18, %v1154_v15 }
 0x1a3   : > { %v1028_v19 = vpop.f32.mrf.mxu0  ;;  %v1156_v20 = vpop.f32.mrf.mxu1 }
 0x1a4   : > { %v1485_v23 = vmax.f32 %v1421_v16, 0.0  ;;  %v1517_v24 = vmax.f32 %v1453_v17, 0.0 }
 0x1a5   : > { %v1031_v25 = vpop.f32.mrf.mxu0  ;;  %v1159_v26 = vpop.f32.mrf.mxu1 }
 0x1a6   : > { %v2262_v27 = vpack.c.bf16 %v1485_v23, %v1484_v21  ;;  %v2342_v28 = vpack.c.bf16 %v1517_v24, %v1516_v22  ;;  %v1422_v31 = vadd.f32 %v3062_v18, %v1031_v25  ;;  %v1454_v32 = vadd.f32 %v3062_v18, %v1159_v26 }
 0x1a7   : > { %v1033_v29 = vpop.f32.mrf.mxu0  ;;  %v1161_v30 = vpop.f32.mrf.mxu1 }
 0x1a8   : > { %2378 = vst [vmem:[%s3069_s22 + $0x50] sm:$0xff] %v2262_v27   ;;  %2394 = vst [vmem:[%s3069_s22 + $0xd0] sm:$0xff] %v2342_v28   ;;  %v1486_v39 = vmax.f32 %v1422_v31, 0.0  ;;  %v1518_v40 = vmax.f32 %v1454_v32, 0.0 }
 0x1a9   : > { %v1034_v33 = vpop.f32.mrf.mxu0  ;;  %v1162_v34 = vpop.f32.mrf.mxu1 }
 0x1aa   : > { %v1423_v35 = vadd.f32 %v3062_v18, %v1034_v33  ;;  %v1455_v36 = vadd.f32 %v3062_v18, %v1162_v34 }
 0x1ab   : > { %v1036_v37 = vpop.f32.mrf.mxu0  ;;  %v1164_v38 = vpop.f32.mrf.mxu1 }
 0x1ac   : > { %v1487_v41 = vmax.f32 %v1423_v35, 0.0  ;;  %v1519_v42 = vmax.f32 %v1455_v36, 0.0 }
 0x1ad   : > { %v1039_v43 = vpop.f32.mrf.mxu0  ;;  %v1167_v44 = vpop.f32.mrf.mxu1 }
 0x1ae   : > { %v2267_v45 = vpack.c.bf16 %v1487_v41, %v1486_v39  ;;  %v2347_v46 = vpack.c.bf16 %v1519_v42, %v1518_v40  ;;  %v1424_v49 = vadd.f32 %v3062_v18, %v1039_v43  ;;  %v1456_v50 = vadd.f32 %v3062_v18, %v1167_v44 }
 0x1af   : > { %v1041_v47 = vpop.f32.mrf.mxu0  ;;  %v1169_v48 = vpop.f32.mrf.mxu1 }
 0x1b0   : > { %2379 = vst [vmem:[%s3069_s22 + $0x58] sm:$0xff] %v2267_v45   ;;  %2395 = vst [vmem:[%s3069_s22 + $0xd8] sm:$0xff] %v2347_v46   ;;  %v1488_v57 = vmax.f32 %v1424_v49, 0.0  ;;  %v1520_v58 = vmax.f32 %v1456_v50, 0.0 }
 0x1b1   : > { %v1042_v51 = vpop.f32.mrf.mxu0  ;;  %v1170_v52 = vpop.f32.mrf.mxu1 }
 0x1b2   : > { %v1425_v53 = vadd.f32 %v3062_v18, %v1042_v51  ;;  %v1457_v54 = vadd.f32 %v3062_v18, %v1170_v52 }
 0x1b3   : > { %v1044_v55 = vpop.f32.mrf.mxu0  ;;  %v1172_v56 = vpop.f32.mrf.mxu1 }
 0x1b4   : > { %v1489_v59 = vmax.f32 %v1425_v53, 0.0  ;;  %v1521_v60 = vmax.f32 %v1457_v54, 0.0 }
 0x1b5   : > { %v1047_v61 = vpop.f32.mrf.mxu0  ;;  %v1175_v62 = vpop.f32.mrf.mxu1 }
 0x1b6   : > { %v2272_v63 = vpack.c.bf16 %v1489_v59, %v1488_v57  ;;  %v2352_v0 = vpack.c.bf16 %v1521_v60, %v1520_v58  ;;  %v1426_v3 = vadd.f32 %v3062_v18, %v1047_v61  ;;  %v1458_v4 = vadd.f32 %v3062_v18, %v1175_v62 }
 0x1b7   : > { %v1049_v1 = vpop.f32.mrf.mxu0  ;;  %v1177_v2 = vpop.f32.mrf.mxu1 }
 0x1b8   : > { %2380 = vst [vmem:[%s3069_s22 + $0x60] sm:$0xff] %v2272_v63   ;;  %2396 = vst [vmem:[%s3069_s22 + $0xe0] sm:$0xff] %v2352_v0   ;;  %v1490_v11 = vmax.f32 %v1426_v3, 0.0  ;;  %v1522_v12 = vmax.f32 %v1458_v4, 0.0 }
 0x1b9   : > { %v1050_v5 = vpop.f32.mrf.mxu0  ;;  %v1178_v6 = vpop.f32.mrf.mxu1 }
 0x1ba   : > { %v1427_v7 = vadd.f32 %v3062_v18, %v1050_v5  ;;  %v1459_v8 = vadd.f32 %v3062_v18, %v1178_v6 }
 0x1bb   : > { %v1052_v9 = vpop.f32.mrf.mxu0  ;;  %v1180_v10 = vpop.f32.mrf.mxu1 }
 0x1bc   : > { %v1491_v13 = vmax.f32 %v1427_v7, 0.0  ;;  %v1523_v14 = vmax.f32 %v1459_v8, 0.0 }
 0x1bd   : > { %v1055_v15 = vpop.f32.mrf.mxu0  ;;  %v1183_v16 = vpop.f32.mrf.mxu1 }
 0x1be   : > { %v2277_v17 = vpack.c.bf16 %v1491_v13, %v1490_v11  ;;  %v2357_v19 = vpack.c.bf16 %v1523_v14, %v1522_v12  ;;  %v1428_v22 = vadd.f32 %v3062_v18, %v1055_v15  ;;  %v1460_v23 = vadd.f32 %v3062_v18, %v1183_v16 }
 0x1bf   : > { %v1057_v20 = vpop.f32.mrf.mxu0  ;;  %v1185_v21 = vpop.f32.mrf.mxu1 }
 0x1c0   : > { %2381 = vst [vmem:[%s3069_s22 + $0x68] sm:$0xff] %v2277_v17   ;;  %2397 = vst [vmem:[%s3069_s22 + $0xe8] sm:$0xff] %v2357_v19   ;;  %v1492_v30 = vmax.f32 %v1428_v22, 0.0  ;;  %v1524_v31 = vmax.f32 %v1460_v23, 0.0 }
 0x1c1   : > { %v1058_v24 = vpop.f32.mrf.mxu0  ;;  %v1186_v25 = vpop.f32.mrf.mxu1 }
 0x1c2   : > { %v1429_v26 = vadd.f32 %v3062_v18, %v1058_v24  ;;  %v1461_v27 = vadd.f32 %v3062_v18, %v1186_v25 }
 0x1c3   : > { %v1060_v28 = vpop.f32.mrf.mxu0  ;;  %v1188_v29 = vpop.f32.mrf.mxu1 }
 0x1c4   : > { %v1493_v32 = vmax.f32 %v1429_v26, 0.0  ;;  %v1525_v33 = vmax.f32 %v1461_v27, 0.0 }
 0x1c5   : > { %v1063_v34 = vpop.f32.mrf.mxu0  ;;  %v1191_v35 = vpop.f32.mrf.mxu1 }
 0x1c6   : > { %v2282_v36 = vpack.c.bf16 %v1493_v32, %v1492_v30  ;;  %v2362_v37 = vpack.c.bf16 %v1525_v33, %v1524_v31  ;;  %v1430_v40 = vadd.f32 %v3062_v18, %v1063_v34  ;;  %v1462_v41 = vadd.f32 %v3062_v18, %v1191_v35 }
 0x1c7   : > { %v1065_v38 = vpop.f32.mrf.mxu0  ;;  %v1193_v39 = vpop.f32.mrf.mxu1 }
 0x1c8   : > { %2382 = vst [vmem:[%s3069_s22 + $0x70] sm:$0xff] %v2282_v36   ;;  %2398 = vst [vmem:[%s3069_s22 + $0xf0] sm:$0xff] %v2362_v37   ;;  %v1494_v48 = vmax.f32 %v1430_v40, 0.0  ;;  %v1526_v49 = vmax.f32 %v1462_v41, 0.0 }
 0x1c9   : > { %v1066_v42 = vpop.f32.mrf.mxu0  ;;  %v1194_v43 = vpop.f32.mrf.mxu1 }
 0x1ca   : > { %v1431_v44 = vadd.f32 %v3062_v18, %v1066_v42  ;;  %v1463_v45 = vadd.f32 %v3062_v18, %v1194_v43 }
 0x1cb   : > { %v1068_v46 = vpop.f32.mrf.mxu0  ;;  %v1196_v47 = vpop.f32.mrf.mxu1 }
 0x1cc   : > { %v1495_v50 = vmax.f32 %v1431_v44, 0.0  ;;  %v1527_v51 = vmax.f32 %v1463_v45, 0.0 }
 0x1ce   : > { %v2287_v18 = vpack.c.bf16 %v1495_v50, %v1494_v48  ;;  %v2367_v52 = vpack.c.bf16 %v1527_v51, %v1526_v49 }
 0x1d0   : > { %2383 = vst [vmem:[%s3069_s22 + $0x78] sm:$0xff] %v2287_v18   ;;  %2399 = vst [vmem:[%s3069_s22 + $0xf8] sm:$0xff] %v2367_v52  }
 0x1d1   : > { %2727 = shalt.err (!%p2724_p0)
}
 0x1d2   : > { %s2728_s28 = scalar_lea.hbm %s3166_s9, 4096  ;;  %s2732_s5 = scalar_lea.hbm %s3220_s3, 196608 }
 0x1d3   : > { %p2729_p5 = scmp.ne.s32.totalorder %s3166_s9, %s2728_s28  ;;  %p2733_p11 = scmp.lt.s32.totalorder %s3166_s9, %s3220_s3 }
 0x1d4   : > { %p2734_p7 = scmp.lt.s32.totalorder %s2732_s5, %s2728_s28 }
 0x1d5   : > { %p2730_p1 = pnand %p2729_p5, %p2925_p12 }
 0x1d6   : > { %p2735_p9 = por %p2734_p7, %p2733_p11 }
 0x1d7   : > { %p2731_p6 = pneg %p2730_p1 }
 0x1d9   : > { %p2736_p4 = pnand %p2735_p9, %p2731_p6 }
 0x1db   : > { %2739 = shalt.err (!%p2736_p4)
}
 0x1dc   : > { %s2809_s22 = smov 64   ;;  %s2810_s24 = smov 4  }
 0x1dd   : > { %2442 = dma.vmem_to_hbm [thread:$0]  (%p2925_p12), %s3168_s6, 4096, %s3166_s9, %s1849_s15, %s2809_s22, %s2809_s22, %s2810_s24  }
 0x1de PF: > { %p2464_p8 = scmp.ge.s32.totalorder %s2798_s17, 2  ;;  %s1878_s8 = sand.u32 1, %s2778_s12  }
 0x1df   : > { %p3232_p13 = scmp.ne.s32.totalorder %s3226_s23, 0  ;;  %s1879_s21 = scalar_lea.sflag [#allocation5], %s1878_s8 }
 0x1e1   : > { %p2456_p10 = pnand %p2464_p8, %p3232_p13 }
 0x1e3   : > { %p2457_p2 = pneg %p2456_p10 }
 0x1e5   : > { %2773 = dma.done.wait (%p2457_p2), %s1879_s21, 4096  }
 0x1e6   : > { %2775 = vsyncadd (%p2457_p2), %s1879_s21, 4294963200  ;;  %s20_s17 = sadd.s32 1, %s2798_s17   ;;  %s3233_s12 = smov %s2782_s13 }
 0x1e7   : > { %p17_p3 = scmp.ge.s32.totalorder %s20_s17, 50   ;;  %s3234_s13 = smov %s2786_s14 }
 0x1e8   : > { %s3235_s14 = smov %s2934_s30  ;;  %s3236_s15 = smov %s2794_s16 }
 0x1e9   : > { %s3237_s16 = smov %s3239_s18  ;;  %19 = sbr.rel (!%p17_p3) target bundleno = 7 (0x7), region = 95 }
 0x1ee   :  { %1884 = vsyncpa [#allocation4], 1 }
 0x1ef   :  { %1886 = vsyncpa [#allocation4 + $0x1], 1 }
 0x1f0   :  { %1887 = vsyncpa [#allocation7], 1 }
 0x1f1   :  { %1888 = vsyncpa [#allocation5], 1 }
 0x1f2   :  { %1890 = vsyncpa [#allocation5 + $0x1], 1 }

</bundles_post_ra>
